<compile_context>
chip_gen: v7x
topology: tpu7x:2x2x1
jax: 0.10.0
libtpu: 0.0.40
codegen_flags: <defaults>
</compile_context>

<pallas_src>
import functools

import jax
import jax.numpy as jnp
from jax.experimental import pallas as pl
from jax.experimental.pallas import tpu as pltpu


def _round_up(a, b):
    return (a + b - 1) // b * b


def _cdiv(a, b):
    return (a + b - 1) // b


def gat_gru_kernel(x_ref, h_ref, wcat_ref, bwcat_ref, ucat_ref, bucat_ref,
                   out_ref, *, hidden):
    """One row-tile of the GRU-style update.

    wcat/ucat pack:  columns [:H]   -> W / U          (H-wide paths)
                     column  [H]    -> W_z / U_z      (z gate)
                     column  [H+1]  -> W_r / U_r      (r gate)
    bwcat[:H] already contains bw + bu (the second U-matmul's bias is pre-folded),
    so hv_pre needs no separate bias add.
    """
    H = hidden
    mm_dt = wcat_ref.dtype          # bf16 fast path or f32 exact path

    h_f32 = h_ref[...].astype(jnp.float32)
    hmat = h_ref[...].astype(mm_dt)
    xmat = x_ref[...].astype(mm_dt)

    # Two fused matmuls; the 1-wide gate projections ride along in padded lanes.
    hw = (jnp.dot(hmat, wcat_ref[...], preferred_element_type=jnp.float32)
          + bwcat_ref[...])                                            # (T, Hp) f32
    xu = (jnp.dot(xmat, ucat_ref[...], preferred_element_type=jnp.float32)
          + bucat_ref[...])                                            # (T, Hp) f32

    # z, r gates: columns H and H+1.
    gates = jax.nn.sigmoid(hw[:, H:H + 2] + xu[:, H:H + 2])            # (T, 2)
    z = gates[:, 0:1]
    r = gates[:, 1:2]

    # H_v = tanh(W(h) + U(r * U(x))).  xu[:, :H] == U(x) + bu.  Reusing ucat for the
    # second matmul is safe: garbage only appears in output columns >= H, which are
    # discarded by the [:, :H] slice below (keep this invariant if editing).
    rux = (r * xu[:, :H]).astype(mm_dt)                                # (T, H)
    hv_pre = hw[:, :H] + jnp.dot(rux, ucat_ref[...],
                                 preferred_element_type=jnp.float32)[:, :H]
    hv = jnp.tanh(hv_pre)                                              # (T, H)

    out_ref[...] = ((1.0 - z) * h_f32 + z * hv).astype(out_ref.dtype)


def prepare_gat_gru_params(params, *, use_bf16=True):
    """One-time packing of the six Linear layers into two (H, Hp) matrices + biases.

    use_bf16=True stores the packed weights in bf16 (halves their HBM/VMEM footprint
    and runs the MXU at the bf16 rate); accumulation in the kernel stays f32.
    """
    H = params["w_t"].shape[0]
    Hp = _round_up(max(H + 2, 128), 128)          # lane-dense padded width
    w_dt = jnp.bfloat16 if use_bf16 else jnp.float32

    def pack(w_t, wz_t, wr_t):
        m = jnp.zeros((H, Hp), jnp.float32)
        m = m.at[:, :H].set(w_t)
        m = m.at[:, H].set(wz_t[:, 0])
        m = m.at[:, H + 1].set(wr_t[:, 0])
        return m.astype(w_dt)

    wcat = pack(params["w_t"], params["wz_t"], params["wr_t"])   # applied to h
    ucat = pack(params["u_t"], params["uz_t"], params["ur_t"])   # applied to x

    bwcat = jnp.zeros((1, Hp), jnp.float32)
    # Fold the second U-matmul's bias (bu) into the W-path bias columns.
    bwcat = bwcat.at[0, :H].set(params["bw"][0] + params["bu"][0])
    bwcat = bwcat.at[0, H].set(params["bz"][0, 0])
    bwcat = bwcat.at[0, H + 1].set(params["br"][0, 0])

    bucat = jnp.zeros((1, Hp), jnp.float32)
    bucat = bucat.at[0, :H].set(params["bu"][0])
    bucat = bucat.at[0, H].set(params["buz"][0, 0])
    bucat = bucat.at[0, H + 1].set(params["bur"][0, 0])

    return dict(wcat=wcat, bwcat=bwcat, ucat=ucat, bucat=bucat)


@functools.partial(jax.jit, static_argnames=("tile_rows",))
def gat_gru_forward(x, h_prime, packed, tile_rows=None):
    """x, h_prime: (..., H).  packed: output of prepare_gat_gru_params."""
    orig_shape = x.shape
    H = orig_shape[-1]
    N = 1
    for d in orig_shape[:-1]:
        N *= d
    Hp = packed["wcat"].shape[1]
    use_bf16 = packed["wcat"].dtype == jnp.bfloat16

    # Free reshape (collapses leading dims); no padding, no dtype conversion in HBM.
    x2 = x.reshape(N, H)
    h2 = h_prime.reshape(N, H)

    # Row tiling: aim for >= ~8 grid steps (pipelining + v7x's two TensorCores under
    # dimension_semantics=("parallel",)), cap block DMAs around ~1 MB, keep a sublane
    # multiple (16 for bf16 packing friendliness, else 8).  Ragged last tile is
    # handled by Pallas's automatic partial-block masking.
    sub = 16 if use_bf16 else 8
    if tile_rows is None:
        tile_rows = 4096 if use_bf16 else 2048
    tile_n = min(tile_rows, max(sub, _round_up(_cdiv(N, 8), sub)))
    tile_n = min(tile_n, _round_up(N, sub))
    grid = (_cdiv(N, tile_n),)

    row_spec = pl.BlockSpec((tile_n, H), lambda i: (i, 0))
    wgt_spec = pl.BlockSpec((H, Hp), lambda i: (0, 0))       # VMEM-resident (constant)
    bias_spec = pl.BlockSpec((1, Hp), lambda i: (0, 0))
    # NOTE: for very large H (Hp >= ~1024) on v7x (64 MiB VMEM) the double-buffered
    # weight blocks would need single-buffering or a tiled-K accumulator; not needed
    # at this size.

    io_bytes = jnp.dtype(x.dtype).itemsize
    w_bytes = jnp.dtype(packed["wcat"].dtype).itemsize
    cost = pl.CostEstimate(
        flops=6 * N * H * Hp + 10 * N * H,                   # 3 matmuls + blend
        transcendentals=N * (H + 2),                         # tanh(NxH) + 2 sigmoids/row
        bytes_accessed=(3 * N * H * io_bytes                 # x, h, out at native width
                        + 2 * H * Hp * w_bytes               # packed weights
                        + 2 * Hp * 4),                       # biases
    )

    out = pl.pallas_call(
        functools.partial(gat_gru_kernel, hidden=H),
        out_shape=jax.ShapeDtypeStruct((N, H), x.dtype),
        grid=grid,
        in_specs=[row_spec, row_spec,
                  wgt_spec, bias_spec,
                  wgt_spec, bias_spec],
        out_specs=row_spec,
        compiler_params=pltpu.CompilerParams(
            dimension_semantics=("parallel",),
            vmem_limit_bytes=32 * 1024 * 1024,
        ),
        cost_estimate=cost,
    )(x2, h2, packed["wcat"], packed["bwcat"], packed["ucat"], packed["bucat"])

    return out.reshape(orig_shape)


def init_params(key, hidden_features):
    """Deterministic parameter init mimicking nn.Linear shapes (weights stored transposed)."""
    H = hidden_features
    ks = jax.random.split(key, 12)
    bound_h = 1.0 / jnp.sqrt(jnp.float32(H))

    def lin(kw, kb, out_dim):
        w_t = jax.random.uniform(kw, (H, out_dim), jnp.float32, -bound_h, bound_h)
        b = jax.random.uniform(kb, (1, out_dim), jnp.float32, -bound_h, bound_h)
        return w_t, b

    wz_t, bz = lin(ks[0], ks[1], 1)
    uz_t, buz = lin(ks[2], ks[3], 1)
    wr_t, br = lin(ks[4], ks[5], 1)
    ur_t, bur = lin(ks[6], ks[7], 1)
    w_t, bw = lin(ks[8], ks[9], H)
    u_t, bu = lin(ks[10], ks[11], H)

    return dict(wz_t=wz_t, bz=bz, uz_t=uz_t, buz=buz,
                wr_t=wr_t, br=br, ur_t=ur_t, bur=bur,
                w_t=w_t, bw=bw, u_t=u_t, bu=bu)


def reference_forward(x, h, p):
    """Pure-JAX reference of the PyTorch forward (eval mode)."""
    z = jax.nn.sigmoid((h @ p["wz_t"] + p["bz"]) + (x @ p["uz_t"] + p["buz"]))
    r = jax.nn.sigmoid((h @ p["wr_t"] + p["br"]) + (x @ p["ur_t"] + p["bur"]))
    ux = x @ p["u_t"] + p["bu"]
    hv = jnp.tanh((h @ p["w_t"] + p["bw"]) + ((r * ux) @ p["u_t"] + p["bu"]))
    return (1.0 - z) * h + z * hv


if __name__ == "__main__":
    B, S, H = 2, 8, 32   # batch=2, seq=8, hidden_features=32

    key = jax.random.PRNGKey(0)
    k_x, k_h, k_p = jax.random.split(key, 3)
    x = jax.random.normal(k_x, (B, S, H), jnp.float32)
    h_prime = jax.random.normal(k_h, (B, S, H), jnp.float32)
    params = init_params(k_p, H)

    ref = reference_forward(x.reshape(-1, H), h_prime.reshape(-1, H), params).reshape(B, S, H)

    # Exact f32-weight path: tight tolerance vs reference.
    packed_f32 = prepare_gat_gru_params(params, use_bf16=False)
    out_f32 = jax.block_until_ready(gat_gru_forward(x, h_prime, packed_f32))
    assert out_f32.shape == (B, S, H)
    assert jnp.allclose(out_f32, ref, atol=1e-4, rtol=1e-4), "f32 mismatch vs reference"

    # Default bf16-weight fast path (f32 accumulation): expected small precision loss.
    packed_bf16 = prepare_gat_gru_params(params, use_bf16=True)
    out_bf16 = jax.block_until_ready(gat_gru_forward(x, h_prime, packed_bf16))
    assert out_bf16.shape == (B, S, H)
    assert float(jnp.max(jnp.abs(out_bf16 - ref))) < 5e-2, "bf16 path diverged"

    print("KERNEL_OK")
</pallas_src>

<mosaic_0001>
module attributes {stable_mosaic.version = 11 : i64} {
  func.func @gat_gru_kernel(%arg0: i32, %arg1: memref<8x32xf32, #tpu.memory_space<vmem>>, %arg2: memref<8x32xf32, #tpu.memory_space<vmem>>, %arg3: memref<32x128xf32, #tpu.memory_space<vmem>>, %arg4: memref<1x128xf32, #tpu.memory_space<vmem>>, %arg5: memref<32x128xf32, #tpu.memory_space<vmem>>, %arg6: memref<1x128xf32, #tpu.memory_space<vmem>>, %arg7: memref<8x32xf32, #tpu.memory_space<vmem>>) attributes {dimension_semantics = [#tpu.dimension_semantics<parallel>], iteration_bounds = array<i64: 2>, scalar_prefetch = 0 : i64, scratch_operands = 0 : i64, tpu.core_type = #tpu.core_type<tc>, window_params = [{transform_indices = @transform_0, window_bounds = array<i64: 8, 32>}, {transform_indices = @transform_1, window_bounds = array<i64: 8, 32>}, {pipeline_mode = #tpu.pipeline_mode<synchronous>, transform_indices = @transform_2, window_bounds = array<i64: 32, 128>}, {pipeline_mode = #tpu.pipeline_mode<synchronous>, transform_indices = @transform_3, window_bounds = array<i64: 1, 128>}, {pipeline_mode = #tpu.pipeline_mode<synchronous>, transform_indices = @transform_4, window_bounds = array<i64: 32, 128>}, {pipeline_mode = #tpu.pipeline_mode<synchronous>, transform_indices = @transform_5, window_bounds = array<i64: 1, 128>}, {transform_indices = @transform_6, window_bounds = array<i64: 8, 32>}]} {
    %c0 = arith.constant 0 : index
    %c0_0 = arith.constant 0 : index
    %0 = vector.load %arg2[%c0, %c0_0] : memref<8x32xf32, #tpu.memory_space<vmem>>, vector<8x32xf32>
    %c0_1 = arith.constant 0 : index
    %c0_2 = arith.constant 0 : index
    %1 = vector.load %arg2[%c0_1, %c0_2] : memref<8x32xf32, #tpu.memory_space<vmem>>, vector<8x32xf32>
    %c0_3 = arith.constant 0 : index
    %c0_4 = arith.constant 0 : index
    %2 = vector.load %arg1[%c0_3, %c0_4] : memref<8x32xf32, #tpu.memory_space<vmem>>, vector<8x32xf32>
    %c0_5 = arith.constant 0 : index
    %c0_6 = arith.constant 0 : index
    %3 = vector.load %arg3[%c0_5, %c0_6] : memref<32x128xf32, #tpu.memory_space<vmem>>, vector<32x128xf32>
    %cst = arith.constant dense<0.000000e+00> : vector<8x128xf32>
    %4 = tpu.matmul %1, %3, %cst {dimension_numbers = #tpu.dot_dimension_numbers<[1], [0], [0], [1], [0, 0, 1, 1], [], []>} : vector<8x32xf32>, vector<32x128xf32>, vector<8x128xf32> -> vector<8x128xf32>
    %c0_7 = arith.constant 0 : index
    %c0_8 = arith.constant 0 : index
    %5 = vector.load %arg4[%c0_7, %c0_8] : memref<1x128xf32, #tpu.memory_space<vmem>>, vector<1x128xf32>
    %6 = vector.broadcast %5 : vector<1x128xf32> to vector<8x128xf32>
    %7 = arith.addf %4, %6 : vector<8x128xf32>
    %c0_9 = arith.constant 0 : index
    %c0_10 = arith.constant 0 : index
    %8 = vector.load %arg5[%c0_9, %c0_10] : memref<32x128xf32, #tpu.memory_space<vmem>>, vector<32x128xf32>
    %cst_11 = arith.constant dense<0.000000e+00> : vector<8x128xf32>
    %9 = tpu.matmul %2, %8, %cst_11 {dimension_numbers = #tpu.dot_dimension_numbers<[1], [0], [0], [1], [0, 0, 1, 1], [], []>} : vector<8x32xf32>, vector<32x128xf32>, vector<8x128xf32> -> vector<8x128xf32>
    %c0_12 = arith.constant 0 : index
    %c0_13 = arith.constant 0 : index
    %10 = vector.load %arg6[%c0_12, %c0_13] : memref<1x128xf32, #tpu.memory_space<vmem>>, vector<1x128xf32>
    %11 = vector.broadcast %10 : vector<1x128xf32> to vector<8x128xf32>
    %12 = arith.addf %9, %11 : vector<8x128xf32>
    %13 = vector.extract_strided_slice %7 {offsets = [0, 32], sizes = [8, 2], strides = [1, 1]} : vector<8x128xf32> to vector<8x2xf32>
    %14 = vector.extract_strided_slice %12 {offsets = [0, 32], sizes = [8, 2], strides = [1, 1]} : vector<8x128xf32> to vector<8x2xf32>
    %15 = arith.addf %13, %14 : vector<8x2xf32>
    %16 = arith.negf %15 : vector<8x2xf32>
    %17 = math.exp %16 : vector<8x2xf32>
    %cst_14 = arith.constant 1.000000e+00 : f32
    %18 = vector.broadcast %cst_14 : f32 to vector<8x2xf32>
    %19 = arith.addf %18, %17 : vector<8x2xf32>
    %20 = arith.divf %18, %19 : vector<8x2xf32>
    %21 = vector.extract_strided_slice %20 {offsets = [0, 0], sizes = [8, 1], strides = [1, 1]} : vector<8x2xf32> to vector<8x1xf32>
    %22 = vector.extract_strided_slice %20 {offsets = [0, 1], sizes = [8, 1], strides = [1, 1]} : vector<8x2xf32> to vector<8x1xf32>
    %23 = vector.extract_strided_slice %12 {offsets = [0, 0], sizes = [8, 32], strides = [1, 1]} : vector<8x128xf32> to vector<8x32xf32>
    %24 = vector.broadcast %22 : vector<8x1xf32> to vector<8x32xf32>
    %25 = arith.mulf %24, %23 : vector<8x32xf32>
    %26 = vector.extract_strided_slice %7 {offsets = [0, 0], sizes = [8, 32], strides = [1, 1]} : vector<8x128xf32> to vector<8x32xf32>
    %c0_15 = arith.constant 0 : index
    %c0_16 = arith.constant 0 : index
    %27 = vector.load %arg5[%c0_15, %c0_16] : memref<32x128xf32, #tpu.memory_space<vmem>>, vector<32x128xf32>
    %cst_17 = arith.constant dense<0.000000e+00> : vector<8x128xf32>
    %28 = tpu.matmul %25, %27, %cst_17 {dimension_numbers = #tpu.dot_dimension_numbers<[1], [0], [0], [1], [0, 0, 1, 1], [], []>} : vector<8x32xf32>, vector<32x128xf32>, vector<8x128xf32> -> vector<8x128xf32>
    %29 = vector.extract_strided_slice %28 {offsets = [0, 0], sizes = [8, 32], strides = [1, 1]} : vector<8x128xf32> to vector<8x32xf32>
    %30 = arith.addf %26, %29 : vector<8x32xf32>
    %31 = math.tanh %30 : vector<8x32xf32>
    %cst_18 = arith.constant 1.000000e+00 : f32
    %32 = vector.broadcast %cst_18 : f32 to vector<8x1xf32>
    %33 = arith.subf %32, %21 : vector<8x1xf32>
    %34 = vector.broadcast %33 : vector<8x1xf32> to vector<8x32xf32>
    %35 = arith.mulf %34, %0 : vector<8x32xf32>
    %36 = vector.broadcast %21 : vector<8x1xf32> to vector<8x32xf32>
    %37 = arith.mulf %36, %31 : vector<8x32xf32>
    %38 = arith.addf %35, %37 : vector<8x32xf32>
    %c0_19 = arith.constant 0 : index
    %c0_20 = arith.constant 0 : index
    %39 = vector.load %arg7[%c0_19, %c0_20] : memref<8x32xf32, #tpu.memory_space<vmem>>, vector<8x32xf32>
    tpu.vector_store %arg7[%c0_19, %c0_20], %38 {strides = array<i32>} : memref<8x32xf32, #tpu.memory_space<vmem>>, vector<8x32xf32>,
    return
  }
  func.func @transform_0(%arg0: i32) -> (i32, i32) {
    %c0_i32 = arith.constant 0 : i32
    %c0_i32_0 = arith.constant 0 : i32
    return %arg0, %c0_i32 : i32, i32
  }
  func.func @transform_1(%arg0: i32) -> (i32, i32) {
    %c0_i32 = arith.constant 0 : i32
    %c0_i32_0 = arith.constant 0 : i32
    return %arg0, %c0_i32 : i32, i32
  }
  func.func @transform_2(%arg0: i32) -> (i32, i32) {
    %c0_i32 = arith.constant 0 : i32
    %c0_i32_0 = arith.constant 0 : i32
    %c0_i32_1 = arith.constant 0 : i32
    return %c0_i32, %c0_i32_0 : i32, i32
  }
  func.func @transform_3(%arg0: i32) -> (i32, i32) {
    %c0_i32 = arith.constant 0 : i32
    %c0_i32_0 = arith.constant 0 : i32
    %c0_i32_1 = arith.constant 0 : i32
    return %c0_i32, %c0_i32_0 : i32, i32
  }
  func.func @transform_4(%arg0: i32) -> (i32, i32) {
    %c0_i32 = arith.constant 0 : i32
    %c0_i32_0 = arith.constant 0 : i32
    %c0_i32_1 = arith.constant 0 : i32
    return %c0_i32, %c0_i32_0 : i32, i32
  }
  func.func @transform_5(%arg0: i32) -> (i32, i32) {
    %c0_i32 = arith.constant 0 : i32
    %c0_i32_0 = arith.constant 0 : i32
    %c0_i32_1 = arith.constant 0 : i32
    return %c0_i32, %c0_i32_0 : i32, i32
  }
  func.func @transform_6(%arg0: i32) -> (i32, i32) {
    %c0_i32 = arith.constant 0 : i32
    %c0_i32_0 = arith.constant 0 : i32
    return %arg0, %c0_i32 : i32, i32
  }
}

</mosaic_0001>

<bundles_post_ra>
// kernel: gat_gru_forward.1
= control target key start
LH: loop header
LB: loop body
LE: loop exit
PB: predicated region body
PF: predicated region fallthrough
CT: control target
= control target key end

     0   :  { %s1445_s0 = inlined_call_operand.hbm [shape: f32[16,32], index: 0, kind: input, shape index: {}]   ;;  %s1446_s1 = inlined_call_operand.hbm [shape: f32[16,32], index: 1, kind: input, shape index: {}]   ;;  %s1447_s2 = inlined_call_operand.hbm [shape: f32[32,128], index: 2, kind: input, shape index: {}]   ;;  %s1448_s3 = inlined_call_operand.vmem [shape: f32[1,128], index: 3, kind: input, shape index: {}]   ;;  %s1449_s4 = inlined_call_operand.hbm [shape: f32[32,128], index: 4, kind: input, shape index: {}]   ;;  %s1450_s5 = inlined_call_operand.vmem [shape: f32[1,128], index: 5, kind: input, shape index: {}]   ;;  %s1451_s6 = inlined_call_operand.hbm [shape: f32[16,32], index: 6, kind: output, shape index: {}]  }
   0x1   :  { %1456 = sst [smem:[#allocation17_spill]] %s1447_s2 }
   0x2   :  { %1457 = sst [smem:[#allocation18_spill]] %s1449_s4 }
   0x3   :  { %11 = vsyncpa [#allocation3], 0 }
   0x4   :  { %13 = vsyncpa [#allocation3 + $0x1], 0 }
   0x5   :  { %14 = vsyncpa [#allocation6], 0 }
   0x6   :  { %16 = vsyncpa [#allocation6 + $0x1], 0 }
   0x7   :  { %17 = vsyncpa [#allocation9], 0 }
   0x8   :  { %18 = vsyncpa [#allocation4], 0 }
   0x9   :  { %20 = vsyncpa [#allocation4 + $0x1], 0  ;;  %s1154_s21 = smov 0   ;;  %s1156_s22 = smov 0  }
   0xa   :  { %s1158_s23 = smov 0   ;;  %s1160_s24 = smov 0  }
   0xb LB: > { %s1175_s25 = sadd.s32 4294967295, %s1105_s24   ;;  %s732_s26 = sadd.s32 4294967294, %s1105_s24   ;;  %s1105_s24 = sphi %s1160_s24, %s1481_s24   ;;  %s1101_s23 = sphi %s1158_s23, %s1480_s23   ;;  %s1097_s22 = sphi %s1156_s22, %s1479_s22   ;;  %s1093_s21 = sphi %s1154_s21, %s1478_s21  }
   0xc   : > { %p46_p0 = scmp.ne.s32.totalorder %s1097_s22, %s1093_s21  ;;  %p1452_p1 = scmp.eq.s32.totalorder %s1175_s25, 0 }
   0xd   : > { %p186_p3 = scmp.eq.s32.totalorder %s732_s26, 1  ;;  %p733_p5 = scmp.ge.s32.totalorder %s1105_s24, 1 }
   0xe   : > { %p1184_p4 = por %p1452_p1, %p46_p0  ;;  %p193_p7 = scmp.lt.s32.totalorder %s1105_s24, 3 }
   0xf   : > { %p1189_p6 = por %p186_p3, %p46_p0  ;;  %s1107_s30 = smov [#allocation7]  }
  0x10   : > { %s1458_s27 = scalar_select %p1184_p4, 1, 0 }
  0x11   : > { %s1459_s28 = scalar_select %p1189_p6, 1, 0 }
  0x12   : > { %p1194_p8 = pnand %p733_p5, %p193_p7  ;;  %s205_s7 = sshll.u32 %s1107_s30, 4  ;;  %s1198_s7 = int_to_ptr.vmem [resolvable:$true] %s205_s7 }
  0x13   : > { %s1108_s9 = smov [#allocation8]   ;;  %s1462_s2 = sld [smem:[#allocation17_spill]] }
  0x14   : > { %s1460_s29 = scalar_select %p1194_p8, 1, 0 }
  0x15   : > { %p837_p9 = pneg %p1194_p8  ;;  %s221_s10 = sshll.u32 %s1108_s9, 4  ;;  %s1209_s10 = int_to_ptr.vmem [resolvable:$true] %s221_s10 }
  0x17   : > { %p1205_p11 = pnand %p837_p9, %p1452_p1 }
  0x19   : > { %s911_s13 = scalar_lea.hbm %s1462_s2, 512  ;;  %p913_p13 = pneg %p1205_p11 }
  0x1a   : > { %p912_p12 = scmp.ne.s32.totalorder %s1462_s2, %s911_s13  ;;  %p918_p5 = scmp.lt.u32.totalorder %s911_s13, %s1462_s2 }
  0x1c   : > { %p914_p0 = pnand %p913_p13, %p912_p12 }
  0x1e   : > { %p915_p3 = pneg %p914_p0 }
  0x20   : > { %p920_p7 = pnand %p918_p5, %p915_p3 }
  0x22   : > { %923 = shalt.err (!%p920_p7)
}
  0x23   : > { %s924_s18 = scalar_lea.vmem %s1198_s7, 512  ;;  %p932_p2 = scmp.lt.s32.totalorder %s1198_s7, %s1198_s7 }
  0x24   : > { %p925_p9 = scmp.ne.s32.totalorder %s1198_s7, %s924_s18  ;;  %p933_p12 = scmp.lt.s32.totalorder %s924_s18, %s924_s18 }
  0x26   : > { %p927_p10 = pnand %p925_p9, %p913_p13  ;;  %p934_p0 = por %p933_p12, %p932_p2 }
  0x28   : > { %p928_p1 = pneg %p927_p10 }
  0x2a   : > { %p935_p6 = pnand %p934_p0, %p928_p1 }
  0x2c   : > { %938 = shalt.err (!%p935_p6)
}
  0x2d   : > { %s1109_s19 = smov 128   ;;  %s1110_s20 = smov 8  }
  0x2e   : > { %840 = dma.hbm_to_vmem [thread:$0]  (!%p1205_p11), %s1462_s2, 512, %s1198_s7, [#allocation6], %s1109_s19, %s1109_s19, %s1110_s20  }
  0x2f   : > { %s1463_s4 = sld [smem:[#allocation18_spill]] }
  0x35   : > { %s939_s12 = scalar_lea.hbm %s1463_s4, 512 }
  0x36   : > { %p940_p2 = scmp.ne.s32.totalorder %s1463_s4, %s939_s12  ;;  %p946_p10 = scmp.lt.u32.totalorder %s939_s12, %s1463_s4 }
  0x38   : > { %p942_p1 = pnand %p940_p2, %p913_p13 }
  0x3a   : > { %p943_p6 = pneg %p942_p1 }
  0x3c   : > { %p948_p3 = pnand %p946_p10, %p943_p6 }
  0x3e   : > { %951 = shalt.err (!%p948_p3)
}
  0x3f   : > { %s952_s7 = scalar_lea.vmem %s1209_s10, 512  ;;  %p960_p12 = scmp.lt.s32.totalorder %s1209_s10, %s1209_s10 }
  0x40   : > { %p953_p5 = scmp.ne.s32.totalorder %s1209_s10, %s952_s7  ;;  %p961_p0 = scmp.lt.s32.totalorder %s952_s7, %s952_s7 }
  0x42   : > { %p955_p7 = pnand %p953_p5, %p913_p13  ;;  %p962_p2 = por %p961_p0, %p960_p12 }
  0x44   : > { %p956_p9 = pneg %p955_p7 }
  0x46   : > { %p963_p1 = pnand %p962_p2, %p956_p9 }
  0x48   : > { %966 = shalt.err (!%p963_p1)
}
  0x49   : > { %843 = dma.hbm_to_vmem [thread:$0]  (!%p1205_p11), %s1463_s4, 512, %s1209_s10, [#allocation9], %s1109_s19, %s1109_s19, %s1110_s20  }
  0x4a   : > { %s1264_s26 = sadd.s32 1, %s1105_s24   ;;  %s33_s8 = sadd.s32 1, %s1101_s23 }
  0x4b   : > { %s30_s30 = ssub.s32 %s1105_s24, %s1264_s26  ;;  %p40_p13 = scmp.ne.s32.totalorder %s1101_s23, %s1097_s22 }
  0x4c   : > { %p31_p6 = scmp.eq.s32.totalorder %s30_s30, 0  ;;  %p41_p10 = scmp.eq.s32.totalorder %s1105_s24, 0 }
  0x4d   : > { %p1464_p3 = scmp.eq.s32.totalorder %s1175_s25, 1  ;;  %p857_p7 = scmp.lt.s32.totalorder %s1105_s24, 2 }
  0x4e   : > { %s1280_s11 = scalar_select %p31_p6, %s1101_s23, %s33_s8  }
  0x4f   : > { %p1274_p5 = por %p1464_p3, %p40_p13  ;;  %p42_p9 = por %p41_p10, %p40_p13 }
  0x50   : > { %1466 = sst [smem:[#allocation16_spill]] %s1280_s11  ;;  %s238_s12 = sand.u32 1, %s1101_s23  }
  0x51   : > { %s1465_s9 = scalar_select %p1274_p5, 1, 0 }
  0x52   : > { %s1283_s10 = sshll.u32 %s238_s12, 3  ;;  %s738_s19 = sshll.u32 %s1105_s24, 7 }
  0x53   : > { %s1289_s14 = scalar_lea.hbm %s1445_s0, %s738_s19  ;;  %s242_s15 = scalar_lea.vmem [#allocation2], %s1283_s10 }
  0x54   : > { %s249_s16 = sshll.u32 %s242_s15, 4  ;;  %p1294_p11 = pnand %p857_p7, %p42_p9  ;;  %s1292_s16 = int_to_ptr.vmem [resolvable:$true] %s249_s16 }
  0x55   : > { %s1301_s8 = scalar_lea.hbm %s1446_s1, %s738_s19  ;;  %s256_s30 = sand.u32 1, %s1105_s24  }
  0x56   : > { %s239_s20 = scalar_lea.sflag [#allocation3], %s238_s12  ;;  %s967_s13 = scalar_lea.hbm %s1289_s14, 128 }
  0x57   : > { %p968_p12 = scmp.ne.s32.totalorder %s1289_s14, %s967_s13  ;;  %p969_p0 = pneg %p1294_p11 }
  0x58   : > { %s972_s4 = scalar_lea.hbm %s1445_s0, 256  ;;  %p973_p13 = scmp.lt.u32.totalorder %s1289_s14, %s1445_s0 }
  0x59   : > { %p970_p2 = pnand %p969_p0, %p968_p12  ;;  %p974_p6 = scmp.lt.u32.totalorder %s972_s4, %s967_s13 }
  0x5a   : > { %p976_p3 = scmp.lt.u32.totalorder %s967_s13, %s1289_s14 }
  0x5b   : > { %p971_p1 = pneg %p970_p2  ;;  %p975_p10 = por %p974_p6, %p973_p13 }
  0x5d   : > { %p977_p7 = por %p976_p3, %p975_p10 }
  0x5f   : > { %p978_p9 = pnand %p977_p7, %p971_p1 }
  0x61   : > { %981 = shalt.err (!%p978_p9)
}
  0x62   : > { %s982_s12 = scalar_lea.vmem %s1292_s16, 128  ;;  %s1111_s2 = smov [#allocation2]  }
  0x63   : > { %p983_p12 = scmp.ne.s32.totalorder %s1292_s16, %s982_s12  ;;  %s987_s19 = sshll.u32 %s1111_s2, 4  ;;  %s988_s19 = int_to_ptr.vmem [resolvable:$false] %s987_s19 }
  0x64   : > { %s989_s11 = scalar_lea.vmem %s988_s19, 256  ;;  %p990_p4 = scmp.lt.s32.totalorder %s1292_s16, %s988_s19 }
  0x65   : > { %p985_p2 = pnand %p983_p12, %p969_p0  ;;  %p991_p13 = scmp.lt.s32.totalorder %s989_s11, %s982_s12 }
  0x67   : > { %p986_p5 = pneg %p985_p2  ;;  %p992_p6 = por %p991_p13, %p990_p4 }
  0x69   : > { %p993_p10 = pnand %p992_p6, %p986_p5 }
  0x6b   : > { %996 = shalt.err (!%p993_p10)
}
  0x6c   : > { %847 = dma.hbm_to_vmem [thread:$0]  (!%p1294_p11), %s1289_s14, 128, %s1292_s16, %s239_s20  }
  0x6d   : > { %s260_s4 = scalar_lea.vmem [#allocation5], %s1283_s10  ;;  %s257_s13 = scalar_lea.sflag [#allocation6], %s256_s30 }
  0x6e   : > { %s267_s18 = sshll.u32 %s260_s4, 4  ;;  %s997_s15 = scalar_lea.hbm %s1301_s8, 128  ;;  %s268_s18 = int_to_ptr.vmem [resolvable:$true] %s267_s18 }
  0x6f   : > { %p998_p4 = scmp.ne.s32.totalorder %s1301_s8, %s997_s15  ;;  %s1002_s2 = scalar_lea.hbm %s1446_s1, 256 }
  0x70   : > { %p1003_p3 = scmp.lt.u32.totalorder %s1301_s8, %s1446_s1  ;;  %p1004_p7 = scmp.lt.u32.totalorder %s1002_s2, %s997_s15 }
  0x71   : > { %p1000_p5 = pnand %p998_p4, %p969_p0  ;;  %p1006_p12 = scmp.lt.u32.totalorder %s997_s15, %s1301_s8 }
  0x72   : > { %p1005_p9 = por %p1004_p7, %p1003_p3 }
  0x73   : > { %p1001_p1 = pneg %p1000_p5 }
  0x74   : > { %p1007_p2 = por %p1006_p12, %p1005_p9 }
  0x76   : > { %p1008_p13 = pnand %p1007_p2, %p1001_p1 }
  0x78   : > { %1011 = shalt.err (!%p1008_p13)
}
  0x79   : > { %s1012_s10 = scalar_lea.vmem %s268_s18, 128  ;;  %s1112_s14 = smov [#allocation5]  }
  0x7a   : > { %p1013_p6 = scmp.ne.s32.totalorder %s268_s18, %s1012_s10  ;;  %s1017_s16 = sshll.u32 %s1112_s14, 4  ;;  %s1018_s16 = int_to_ptr.vmem [resolvable:$false] %s1017_s16 }
  0x7b   : > { %s1019_s30 = scalar_lea.vmem %s1018_s16, 256  ;;  %p1020_p5 = scmp.lt.s32.totalorder %s268_s18, %s1018_s16 }
  0x7c   : > { %p1015_p10 = pnand %p1013_p6, %p969_p0  ;;  %p1021_p8 = scmp.lt.s32.totalorder %s1019_s30, %s1012_s10 }
  0x7e   : > { %p1016_p4 = pneg %p1015_p10  ;;  %p1022_p3 = por %p1021_p8, %p1020_p5 }
  0x80   : > { %p1023_p7 = pnand %p1022_p3, %p1016_p4 }
  0x82   : > { %1026 = shalt.err (!%p1023_p7)
}
  0x83   : > { %850 = dma.hbm_to_vmem [thread:$0]  (!%p1294_p11), %s1301_s8, 128, %s268_s18, %s257_s13  }
  0x84   : > { %p1468_p1 = scmp.ne.s32.totalorder %s1460_s29, 0 }
  0x85   : > { %s1354_s20 = sand.u32 (!%p1468_p1), 1, %s1097_s22   ;;  %p1469_p8 = scmp.ne.s32.totalorder (!%p1468_p1), %s1458_s27, 0 }
  0x86   : > { %276 = sbr.rel (%p1468_p1) target bundleno = 779 (0x30b), region = 44  ;;  %s1357_s4 = sshll.u32 (!%p1468_p1), %s1354_s20, 3 }
  0x87   : > { %s279_s15 = scalar_lea.sflag (!%p1468_p1), [#allocation3], %s1354_s20  ;;  %s282_s17 = scalar_lea.vmem (!%p1468_p1), [#allocation2], %s1357_s4 }
  0x8d   : > { %1072 = dma.done.wait (%p1469_p8), %s279_s15, 128  }
  0x8e   : > { %1074 = vsyncadd (%p1469_p8), %s279_s15, 4294967168  ;;  %s287_s29 = sand.u32 1, %s1175_s25   ;;  %s291_s8 = scalar_lea.vmem [#allocation5], %s1357_s4 }
  0x8f   : > { %s288_s7 = scalar_lea.sflag [#allocation6], %s287_s29 }
  0x90   : > { %1076 = dma.done.wait (%p1469_p8), %s288_s7, 128  }
  0x91   : > { %1078 = vsyncadd (%p1469_p8), %s288_s7, 4294967168  ;;  %p1470_p11 = scmp.eq.s32.totalorder %s1175_s25, 0 }
  0x93   : > { %1080 = dma.done.wait (%p1470_p11), [#allocation6], 512   ;;  %p1471_p0 = pmov %p1470_p11 }
  0x95   : > { %1082 = vsyncadd (%p1471_p0), [#allocation6], 4294966784  ;;  %p1472_p9 = pmov %p1471_p0 }
  0x96   : > { %p1473_p12 = pmov %p1471_p0 }
  0x97   : > { %1084 = dma.done.wait (%p1472_p9), [#allocation9], 512  }
  0x98   : > { %1086 = vsyncadd (%p1473_p12), [#allocation9], 4294966784  ;;  %v1113_v0 = vmov 0.0|0.0   ;;  %vm1114_vm0 = vmmov 0   ;;  %v1115_v1 = vmov 0.0   ;;  %v335_v2 = vld [vmem:[#allocation7] sm:$0xff] }
  0x99   : > { %805 = vmatprep.subr.bf16.mxu0 %v1113_v0  ;;  %811 = vmatprep.subr.bf16.mxu1 %v1113_v0  ;;  %v336_v3 = vld [vmem:[#allocation7 + $0x8] sm:$0xff]  ;;  %v420_v4 = vld [vmem:[#allocation8] sm:$0xff]  ;;  %v337_v7 = vld [vmem:[#allocation7 + $0x10] sm:$0xff]  ;;  %vm346_vm1 = vcmask 261120   ;;  %v1116_v16 = vmov 32   ;;  %v1117_v17 = vmov 33  }
  0x9a   : > { %780 = vmatprep.mubr.msk.f32.mxu0 %vm1114_vm0, %v1115_v1  ;;  %791 = vmatprep.mubr.msk.f32.mxu1 %vm1114_vm0, %v1115_v1  ;;  %v806_v5 = vpack.c.bf16 %v336_v3, %v335_v2  ;;  %v421_v6 = vld [vmem:[#allocation8 + $0x8] sm:$0xff]  ;;  %v338_v8 = vld [vmem:[#allocation7 + $0x18] sm:$0xff]  ;;  %v422_v10 = vld [vmem:[#allocation8 + $0x10] sm:$0xff]  ;;  %s754_s2 = sshll.u32 %s1175_s25, 7  ;;  %s332_s19 = scalar_lea.vmem [#allocation10], %s1357_s4 }
  0x9b   : > { %v812_v9 = vpack.c.bf16 %v421_v6, %v420_v4  ;;  %v423_v11 = vld [vmem:[#allocation8 + $0x18] sm:$0xff]  ;;  %v809_v12 = vpack.c.bf16 %v338_v8, %v337_v7  ;;  %v334_v15 = vld [vmem:[%s282_s17] sm:$0xff]  ;;  %904 = vset.pattern.permute.xlu1 %v1116_v16  ;;  %902 = vset.pattern.permute.xlu0 %v1117_v17  ;;  %s620_s11 = sshll.u32 %s332_s19, 4  ;;  %s1400_s16 = scalar_lea.hbm %s1451_s6, %s754_s2  ;;  %s1402_s11 = int_to_ptr.vmem [resolvable:$true] %s620_s11 }
  0x9c   : > { %807 = vmatpush3.bf16.msra.mxu0 %v806_v5  ;;  %v815_v13 = vpack.c.bf16 %v423_v11, %v422_v10  ;;  %v333_v14 = vld [vmem:[%s291_s8] sm:$0xff]  ;;  %v747_v18 = vld [vmem:[%s1448_s3] ss:$0 sm:$0xff]  ;;  %s607_s30 = scalar_lea.sflag [#allocation4], %s1354_s20  ;;  %s1027_s15 = scalar_lea.vmem %s1402_s11, 128 }
  0x9d   : > { %813 = vmatpush3.bf16.msra.mxu1 %v812_v9  ;;  %808 = vmatprep.subr.bf16.mxu0 %v1113_v0  ;;  %v749_v19 = vld [vmem:[%s1450_s5] ss:$0 sm:$0xff]  ;;  %p1028_p2 = scmp.ne.s32.totalorder %s1402_s11, %s1027_s15  ;;  %p1474_p13 = scmp.ne.s32.totalorder %s1465_s9, 0 }
  0x9e   : > { %814 = vmatprep.subr.bf16.mxu1 %v1113_v0  ;;  %s1118_s25 = smov [#allocation10]  }
  0x9f   : > { %p1029_p6 = pnand %p1028_p2, %p1474_p13  ;;  %s1031_s4 = sshll.u32 %s1118_s25, 4  ;;  %s1032_s4 = int_to_ptr.vmem [resolvable:$false] %s1031_s4 }
  0xa0   : > { %810 = vmatpush3.bf16.msra.mxu0 %v809_v12  ;;  %s1033_s17 = scalar_lea.vmem %s1032_s4, 256  ;;  %p1034_p4 = scmp.lt.s32.totalorder %s1402_s11, %s1032_s4 }
  0xa1   : > { %816 = vmatpush3.bf16.msra.mxu1 %v815_v13  ;;  %817 = vmatprep.subr.bf16.mxu0 %v1113_v0  ;;  %p1030_p10 = pneg %p1029_p6  ;;  %p1035_p5 = scmp.lt.s32.totalorder %s1033_s17, %s1027_s15 }
  0xa3   : > { %781 = vmatmul.mubr.msk.f32.vlgmr.msra.gmra.mrb[0].mxu0 %vm346_vm1, %v333_v14  ;;  %p1036_p3 = por %p1035_p5, %p1034_p4 }
  0xa4   : > { %792 = vmatmul.mubr.msk.f32.vlgmr.msra.gmra.mrb[0].mxu1 %vm346_vm1, %v334_v15  ;;  %819 = vmatpush3.bf16.msra.mxu0 %v812_v9 }
  0xa5   : > { %820 = vmatprep.subr.bf16.mxu0 %v1113_v0  ;;  %802 = vmatprep.mubr.msk.f32.mxu0 %vm1114_vm0, %v1115_v1  ;;  %p1037_p7 = pnand %p1036_p3, %p1030_p10 }
  0xa8   : > { %822 = vmatpush3.bf16.msra.mxu0 %v815_v13 }
 0x176   : > { %v416_v20 = vpop.f32.mrb[0].mxu0 }
 0x177   : > { %v417_v21 = vadd.f32 %v747_v18, %v416_v20  ;;  %v500_v22 = vpop.f32.mrb[0].mxu1  ;;  %v782_v23 = vpop.f32.mrb[1].mxu0 }
 0x178   : > { %v501_v24 = vadd.f32 %v749_v19, %v500_v22  ;;  %v793_v25 = vpop.f32.mrb[1].mxu1 }
 0x17a   : > { %v504_v26 = vadd.f32 %v501_v24, %v417_v21 }
 0x17c   : > { %v751_v27 = vmul.f32 -1.442695, %v504_v26 }
 0x17e   : > { %905 = vpow2.f32 %v751_v27 }
 0x188   : > { %v906_v28 = vpop.eup %905 }
 0x189   : > { %v508_v29 = vadd.f32 1.0, %v906_v28 }
 0x18b   : > { %907 = vrcp.f32 %v508_v29 }
 0x195   : > { %v908_v30 = vpop.eup %907 }
 0x196   : > { %600 = vperm.xlu1 %904, %v908_v30   ;;  %513 = vperm.xlu0 %902, %v908_v30   ;;  %v592_v31 = vsub.f32 1.0, %v908_v30 }
 0x19a   : > { %903 = vset.pattern.permute.xlu0 %v1116_v16 }
 0x19b   : > { %595 = vperm.xlu0 %903, %v592_v31  }
 0x215   : > { %v514_v32 = vpop.permute.xlu0 %513  ;;  %v601_v39 = vpop.permute.xlu1 %600 }
 0x216   : > { %v516_v33 = vmul.f32 %v514_v32, %v501_v24 }
 0x218   : > { %803 = vmatmul.mubr.msk.f32.vlgmr.msra.gmra.mrb[2].mxu0 %vm346_vm1, %v516_v33 }
 0x21a   : > { %v596_v37 = vpop.permute.xlu0 %595 }
 0x21b   : > { %v598_v40 = vmul.f32 %v596_v37, %v333_v14 }
 0x2eb   : > { %v586_v34 = vpop.f32.mrb[2].mxu0 }
 0x2ec   : > { %v590_v35 = vadd.f32 %v586_v34, %v417_v21  ;;  %v804_v36 = vpop.f32.mrb[3].mxu0 }
 0x2ee   : > { %909 = vtanh.f32 %v590_v35 }
 0x2f8   : > { %v910_v38 = vpop.eup %909 }
 0x2f9   : > { %v603_v41 = vmul.f32 %v910_v38, %v601_v39 }
 0x2fb   : > { %v604_v42 = vadd.f32 %v603_v41, %v598_v40 }
 0x2fd   : > { %605 = vst.msk [vmem:[%s332_s19] sm:$0xff] %vm346_vm1, %v604_v42 }
 0x2fe   : > { %1040 = shalt.err (!%p1037_p7)
}
 0x2ff   : > { %s1041_s20 = scalar_lea.hbm %s1400_s16, 128  ;;  %s1045_s8 = scalar_lea.hbm %s1451_s6, 256 }
 0x300   : > { %p1042_p1 = scmp.ne.s32.totalorder %s1400_s16, %s1041_s20  ;;  %p1046_p0 = scmp.lt.u32.totalorder %s1400_s16, %s1451_s6 }
 0x301   : > { %p1047_p9 = scmp.lt.u32.totalorder %s1045_s8, %s1041_s20  ;;  %p1049_p2 = scmp.lt.u32.totalorder %s1041_s20, %s1400_s16 }
 0x302   : > { %p1043_p8 = pnand %p1042_p1, %p1474_p13 }
 0x303   : > { %p1048_p12 = por %p1047_p9, %p1046_p0 }
 0x304   : > { %p1044_p11 = pneg %p1043_p8 }
 0x305   : > { %p1050_p6 = por %p1049_p2, %p1048_p12 }
 0x307   : > { %p1051_p10 = pnand %p1050_p6, %p1044_p11 }
 0x309   : > { %1054 = shalt.err (!%p1051_p10)
}
 0x30a   : > { %835 = dma.vmem_to_hbm [thread:$0]  (%p1474_p13), %s1402_s11, 128, %s1400_s16, %s607_s30  }
 0x30b PF: > { %s632_s13 = sand.u32 1, %s1093_s21   ;;  %p1475_p4 = scmp.ne.s32.totalorder %s1459_s28, 0 }
 0x30c   : > { %p1476_p5 = scmp.ge.s32.totalorder %s1105_s24, 2  ;;  %s633_s12 = scalar_lea.sflag [#allocation4], %s632_s13 }
 0x30e   : > { %p852_p3 = pnand %p1476_p5, %p1475_p4 }
 0x310   : > { %1088 = dma.done.wait (!%p852_p3), %s633_s12, 128  }
 0x311   : > { %1090 = vsyncadd (!%p852_p3), %s633_s12, 4294967168  ;;  %s1477_s2 = sld [smem:[#allocation16_spill]]  ;;  %p23_p7 = scmp.ge.s32.totalorder %s1264_s26, 4  }
 0x312   : > { %s1478_s21 = smov %s1097_s22  ;;  %s1479_s22 = smov %s1101_s23 }
 0x313   : > { %s1481_s24 = smov %s1264_s26  ;;  %25 = sbr.rel (!%p23_p7) target bundleno = 11 (0xb), region = 110 }
 0x317   : > { %s1480_s23 = smov %s1477_s2 }
 0x31a   :  { %638 = vsyncpa [#allocation3], 1 }
 0x31b   :  { %640 = vsyncpa [#allocation3 + $0x1], 1 }
 0x31c   :  { %641 = vsyncpa [#allocation6], 1 }
 0x31d   :  { %643 = vsyncpa [#allocation6 + $0x1], 1 }
 0x31e   :  { %644 = vsyncpa [#allocation9], 1 }
 0x31f   :  { %645 = vsyncpa [#allocation4], 1 }
 0x320   :  { %647 = vsyncpa [#allocation4 + $0x1], 1 }

</bundles_post_ra>
